<compile_context>
chip_gen: v6e
topology: v6e:2x2x1
jax: 0.10.0
libtpu: 0.0.40
codegen_flags: <defaults>
</compile_context>

<pallas_src>
import jax
import jax.numpy as jnp
from jax.experimental import pallas as pl
from jax.experimental.pallas import tpu as pltpu


def _round_hidden(in_features, hidden_features=None, multiple_of=256, scaling=1):
    if hidden_features is None:
        hidden_features = int(8 * in_features / 3)
    return int((scaling * hidden_features + multiple_of - 1) // multiple_of * multiple_of)


# ---------------------------------------------------------------------------
# Kernel
# ---------------------------------------------------------------------------
def _gated_mlp_kernel(x_ref, w11_ref, b11_ref, w12_ref, b12_ref, w2_ref, b2_ref,
                      o_ref, acc_ref):
    h = pl.program_id(1)

    @pl.when(h == 0)
    def _():
        acc_ref[...] = jnp.zeros_like(acc_ref)

    cdt = w11_ref.dtype
    x = x_ref[...].astype(cdt)                      # in-kernel cast (no wrapper astype pass)

    # fc11 / fc12 on the current hidden block; f32 accumulation on the MXU.
    v = jnp.dot(x, w11_ref[...], preferred_element_type=jnp.float32) + b11_ref[...]
    g = jnp.dot(x, w12_ref[...], preferred_element_type=jnp.float32) + b12_ref[...]

    # GLU = value * sigmoid(gate); keep f32 math, cast once at the fc2 operand.
    act = (v * jax.nn.sigmoid(g)).astype(cdt)

    # norm = nn.Identity() (default norm_layer=False).  fc2 partial accumulate.
    acc_ref[...] += jnp.dot(act, w2_ref[...], preferred_element_type=jnp.float32)

    @pl.when(h == pl.num_programs(1) - 1)
    def _():
        o_ref[...] = (acc_ref[...] + b2_ref[...]).astype(o_ref.dtype)


# ---------------------------------------------------------------------------
# Host-side helpers
# ---------------------------------------------------------------------------
def prepare_gated_mlp_params(w11, b11, w12, b12, w2, b2, compute_dtype=jnp.bfloat16):
    """One-time weight preparation (transpose + cast).  Call at module init, NOT per
    forward: avoids a per-call HBM relayout/cast of every weight."""
    return dict(
        w11_t=jnp.asarray(w11).T.astype(compute_dtype),   # (in, hidden)
        w12_t=jnp.asarray(w12).T.astype(compute_dtype),   # (in, hidden)
        w2_t=jnp.asarray(w2).T.astype(compute_dtype),     # (hidden, out)
        b11=jnp.asarray(b11).reshape(1, -1).astype(jnp.float32),
        b12=jnp.asarray(b12).reshape(1, -1).astype(jnp.float32),
        b2=jnp.asarray(b2).reshape(1, -1).astype(jnp.float32),
    )


def _vmem_capacity_bytes():
    try:
        info = pltpu.get_tpu_info()
        cap = getattr(info, "vmem_capacity_bytes", None)
        if cap:
            return int(cap)
    except Exception:
        pass
    return 64 << 20  # conservative (v7x-sized) fallback


def _divisor_tiles(hidden, lane=256):
    """Hidden-axis tile candidates: divisors of hidden that are multiples of 256 lanes,
    descending.  Exact division keeps the fc2 reduction free of masked garbage columns."""
    ths = []
    for d in range(1, max(1, hidden // lane) + 1):
        if hidden % d == 0 and (hidden // d) % lane == 0:
            ths.append(hidden // d)
    return ths or [hidden]


def _choose_tiles(M, in_f, hidden, out_f, x_item, w_item, o_item, vmem_cap):
    """Pick (tm, th) from the real VMEM budget of this TPU generation."""
    budget = vmem_cap * 3 // 4                       # compiler scratch / semaphore headroom

    def footprint(tm, th, n_h):
        nbw = 1 if n_h == 1 else 2                   # grid-invariant weights single-buffered
        f = 2 * tm * in_f * x_item                   # x tile (double-buffered, input dtype)
        f += nbw * 2 * in_f * th * w_item            # W11^T + W12^T blocks
        f += nbw * th * out_f * w_item               # W2^T block
        f += nbw * 2 * 8 * th * 4 + 8 * out_f * 4    # biases (f32, sublane-padded)
        f += 2 * tm * out_f * o_item                 # out tile (double-buffered)
        f += tm * out_f * 4                          # f32 accumulator scratch
        f += tm * (3 * th + out_f) * 4               # live f32 intermediates
        return f

    if M >= 256:
        # Big tiles for MXU occupancy, keep >= 2 m-steps (feeds both v7x TCs via "parallel").
        tms = [t for t in (512, 256, 128) if M >= 2 * t] or [128]
    else:
        # Decode / small-M path: one tile, rounded to 16 rows (bf16 sublane packing).
        tms = [max(16, -(-M // 16) * 16)]
    ths = _divisor_tiles(hidden)

    for tm in tms:
        for th in ths:
            n_h = hidden // th
            est = footprint(tm, th, n_h)
            if est <= budget:
                return tm, th, est
    tm, th = tms[-1], ths[-1]
    return tm, th, footprint(tm, th, hidden // th)


def _spec(shape, index_map, buffer_count=None):
    """BlockSpec with optional explicit buffer count (graceful fallback if the installed
    JAX does not support pipeline_mode)."""
    if buffer_count is not None and hasattr(pl, "Buffered"):
        try:
            return pl.BlockSpec(shape, index_map, pipeline_mode=pl.Buffered(buffer_count))
        except Exception:
            pass
    return pl.BlockSpec(shape, index_map)


def gated_mlp(x, params, *, tm=None, th=None):
    """GatedMLP forward.  `params` comes from prepare_gated_mlp_params (pre-transposed,
    pre-cast weights).  x: (..., in_features)."""
    *lead, in_f = x.shape
    M = 1
    for d in lead:
        M *= d
    hidden = params["w11_t"].shape[1]
    out_f = params["w2_t"].shape[1]

    x_item = jnp.dtype(x.dtype).itemsize
    w_item = jnp.dtype(params["w11_t"].dtype).itemsize
    o_item = x_item                                   # output keeps the input dtype

    vmem_cap = _vmem_capacity_bytes()
    a_tm, a_th, est = _choose_tiles(M, in_f, hidden, out_f, x_item, w_item, o_item, vmem_cap)
    tm = tm or a_tm
    th = th or a_th
    assert hidden % th == 0, "hidden tile must divide hidden exactly"
    n_m = pl.cdiv(M, tm)                              # ragged last tile handled by Pallas
    n_h = hidden // th

    # Grid-invariant weight/bias blocks: single-buffer (double-buffering them only doubles
    # resident VMEM with zero pipelining benefit).  When streaming over hidden they keep the
    # default double buffering so the next block's DMA overlaps compute.
    wbuf = 1 if n_h == 1 else None

    # VMEM limit from the measured footprint + headroom, bounded by the real capacity
    # of this generation (no blind 64 MiB clamp).
    vmem_limit = int(min(max(est + (8 << 20), 32 << 20),
                         max(vmem_cap - (8 << 20), 32 << 20)))

    x2 = x.reshape(M, in_f)
    out = pl.pallas_call(
        _gated_mlp_kernel,
        out_shape=jax.ShapeDtypeStruct((M, out_f), x.dtype),
        grid_spec=pltpu.PrefetchScalarGridSpec(
            num_scalar_prefetch=0,
            grid=(n_m, n_h),
            in_specs=[
                _spec((tm, in_f), lambda i, h: (i, 0)),          # x tile
                _spec((in_f, th), lambda i, h: (0, h), wbuf),    # W11^T block
                _spec((1, th), lambda i, h: (0, h), wbuf),       # b11 block
                _spec((in_f, th), lambda i, h: (0, h), wbuf),    # W12^T block
                _spec((1, th), lambda i, h: (0, h), wbuf),       # b12 block
                _spec((th, out_f), lambda i, h: (h, 0), wbuf),   # W2^T block
                _spec((1, out_f), lambda i, h: (0, 0), 1),       # b2 (always grid-invariant)
            ],
            out_specs=pl.BlockSpec((tm, out_f), lambda i, h: (i, 0)),
            scratch_shapes=[pltpu.VMEM((tm, out_f), jnp.float32)],
        ),
        compiler_params=pltpu.CompilerParams(
            dimension_semantics=("parallel", "arbitrary"),
            vmem_limit_bytes=vmem_limit),
    )(x2, params["w11_t"], params["b11"], params["w12_t"], params["b12"],
      params["w2_t"], params["b2"])
    return out.reshape(*lead, out_f)


def gated_mlp_from_torch_weights(x, w11, b11, w12, b12, w2, b2,
                                 compute_dtype=jnp.bfloat16):
    """Convenience wrapper: PyTorch Linear-layout weights.  For production, call
    prepare_gated_mlp_params once and reuse `params` across forwards."""
    params = prepare_gated_mlp_params(w11, b11, w12, b12, w2, b2, compute_dtype)
    return gated_mlp(x, params)


# ---------------------------------------------------------------------------
# Demo / correctness check
# ---------------------------------------------------------------------------
if __name__ == "__main__":
    # Small shapes consistent with the module defaults.
    batch, seq, in_features = 2, 8, 128
    hidden = _round_hidden(in_features)          # int(8*128/3)=341 -> 512
    out_features = in_features                   # default out_features = in_features

    key = jax.random.PRNGKey(0)
    ks = jax.random.split(key, 7)
    scale_in = 1.0 / jnp.sqrt(in_features)
    scale_h = 1.0 / jnp.sqrt(hidden)

    x = jax.random.normal(ks[0], (batch, seq, in_features), dtype=jnp.float32)
    # PyTorch Linear parameter layouts: weight (out, in), bias (out,)
    w11 = jax.random.uniform(ks[1], (hidden, in_features), jnp.float32, -scale_in, scale_in)
    b11 = jax.random.uniform(ks[2], (hidden,), jnp.float32, -scale_in, scale_in)
    w12 = jax.random.uniform(ks[3], (hidden, in_features), jnp.float32, -scale_in, scale_in)
    b12 = jax.random.uniform(ks[4], (hidden,), jnp.float32, -scale_in, scale_in)
    w2 = jax.random.uniform(ks[5], (out_features, hidden), jnp.float32, -scale_h, scale_h)
    b2 = jax.random.uniform(ks[6], (out_features,), jnp.float32, -scale_h, scale_h)

    # Reference (plain JAX, f32).
    h1 = x @ w11.T + b11
    gate = x @ w12.T + b12
    ref = (h1 * jax.nn.sigmoid(gate)) @ w2.T + b2

    # f32 operands: must match the reference tightly.
    params_f32 = prepare_gated_mlp_params(w11, b11, w12, b12, w2, b2,
                                          compute_dtype=jnp.float32)
    y_f32 = gated_mlp(x, params_f32)
    jax.block_until_ready(y_f32)
    assert y_f32.shape == (batch, seq, out_features)
    assert jnp.allclose(y_f32, ref, atol=1e-4, rtol=1e-4)

    # bf16 operands (default MXU fast path, f32 accumulation): looser tolerance —
    # intentionally deviates from the f32 PyTorch reference.
    params_bf16 = prepare_gated_mlp_params(w11, b11, w12, b12, w2, b2,
                                           compute_dtype=jnp.bfloat16)
    y_bf16 = gated_mlp(x, params_bf16)
    jax.block_until_ready(y_bf16)
    assert y_bf16.shape == (batch, seq, out_features)
    assert jnp.allclose(y_bf16, ref, atol=3e-2, rtol=3e-2)

    print("KERNEL_OK")
</pallas_src>

<mosaic_0001>
module attributes {stable_mosaic.version = 11 : i64} {
  func.func @_gated_mlp_kernel(%arg0: i32, %arg1: i32, %arg2: memref<16x128xf32, #tpu.memory_space<vmem>>, %arg3: memref<128x512xf32, #tpu.memory_space<vmem>>, %arg4: memref<1x512xf32, #tpu.memory_space<vmem>>, %arg5: memref<128x512xf32, #tpu.memory_space<vmem>>, %arg6: memref<1x512xf32, #tpu.memory_space<vmem>>, %arg7: memref<512x128xf32, #tpu.memory_space<vmem>>, %arg8: memref<1x128xf32, #tpu.memory_space<vmem>>, %arg9: memref<16x128xf32, #tpu.memory_space<vmem>>, %arg10: memref<16x128xf32, #tpu.memory_space<vmem>>) attributes {dimension_semantics = [#tpu.dimension_semantics<parallel>, #tpu.dimension_semantics<arbitrary>], iteration_bounds = array<i64: 1, 1>, scalar_prefetch = 0 : i64, scratch_operands = 1 : i64, tpu.core_type = #tpu.core_type<tc>, window_params = [{transform_indices = @transform_0, window_bounds = array<i64: 16, 128>}, {pipeline_mode = #tpu.pipeline_mode<synchronous>, transform_indices = @transform_1, window_bounds = array<i64: 128, 512>}, {pipeline_mode = #tpu.pipeline_mode<synchronous>, transform_indices = @transform_2, window_bounds = array<i64: 1, 512>}, {pipeline_mode = #tpu.pipeline_mode<synchronous>, transform_indices = @transform_3, window_bounds = array<i64: 128, 512>}, {pipeline_mode = #tpu.pipeline_mode<synchronous>, transform_indices = @transform_4, window_bounds = array<i64: 1, 512>}, {pipeline_mode = #tpu.pipeline_mode<synchronous>, transform_indices = @transform_5, window_bounds = array<i64: 512, 128>}, {pipeline_mode = #tpu.pipeline_mode<synchronous>, transform_indices = @transform_6, window_bounds = array<i64: 1, 128>}, {transform_indices = @transform_7, window_bounds = array<i64: 16, 128>}]} {
    %c0_i32 = arith.constant 0 : i32
    %0 = arith.cmpi eq, %arg1, %c0_i32 : i32
    %1 = arith.extui %0 : i1 to i32
    %c0_i32_0 = arith.constant 0 : i32
    %2 = arith.cmpi ne, %1, %c0_i32_0 : i32
    scf.if %2 {
      %cst_21 = arith.constant 0.000000e+00 : f32
      %28 = vector.broadcast %cst_21 : f32 to vector<16x128xf32>
      %c0_22 = arith.constant 0 : index
      %c0_23 = arith.constant 0 : index
      %29 = vector.load %arg10[%c0_22, %c0_23] : memref<16x128xf32, #tpu.memory_space<vmem>>, vector<16x128xf32>
      tpu.vector_store %arg10[%c0_22, %c0_23], %28 {strides = array<i32>} : memref<16x128xf32, #tpu.memory_space<vmem>>, vector<16x128xf32>,
    } else {
    }
    %c0 = arith.constant 0 : index
    %c0_1 = arith.constant 0 : index
    %3 = vector.load %arg2[%c0, %c0_1] : memref<16x128xf32, #tpu.memory_space<vmem>>, vector<16x128xf32>
    %c0_2 = arith.constant 0 : index
    %c0_3 = arith.constant 0 : index
    %4 = vector.load %arg3[%c0_2, %c0_3] : memref<128x512xf32, #tpu.memory_space<vmem>>, vector<128x512xf32>
    %cst = arith.constant dense<0.000000e+00> : vector<16x512xf32>
    %5 = tpu.matmul %3, %4, %cst {dimension_numbers = #tpu.dot_dimension_numbers<[1], [0], [0], [1], [0, 0, 1, 1], [], []>} : vector<16x128xf32>, vector<128x512xf32>, vector<16x512xf32> -> vector<16x512xf32>
    %c0_4 = arith.constant 0 : index
    %c0_5 = arith.constant 0 : index
    %6 = vector.load %arg4[%c0_4, %c0_5] : memref<1x512xf32, #tpu.memory_space<vmem>>, vector<1x512xf32>
    %7 = vector.broadcast %6 : vector<1x512xf32> to vector<16x512xf32>
    %8 = arith.addf %5, %7 : vector<16x512xf32>
    %c0_6 = arith.constant 0 : index
    %c0_7 = arith.constant 0 : index
    %9 = vector.load %arg5[%c0_6, %c0_7] : memref<128x512xf32, #tpu.memory_space<vmem>>, vector<128x512xf32>
    %cst_8 = arith.constant dense<0.000000e+00> : vector<16x512xf32>
    %10 = tpu.matmul %3, %9, %cst_8 {dimension_numbers = #tpu.dot_dimension_numbers<[1], [0], [0], [1], [0, 0, 1, 1], [], []>} : vector<16x128xf32>, vector<128x512xf32>, vector<16x512xf32> -> vector<16x512xf32>
    %c0_9 = arith.constant 0 : index
    %c0_10 = arith.constant 0 : index
    %11 = vector.load %arg6[%c0_9, %c0_10] : memref<1x512xf32, #tpu.memory_space<vmem>>, vector<1x512xf32>
    %12 = vector.broadcast %11 : vector<1x512xf32> to vector<16x512xf32>
    %13 = arith.addf %10, %12 : vector<16x512xf32>
    %14 = arith.negf %13 : vector<16x512xf32>
    %15 = math.exp %14 : vector<16x512xf32>
    %cst_11 = arith.constant 1.000000e+00 : f32
    %16 = vector.broadcast %cst_11 : f32 to vector<16x512xf32>
    %17 = arith.addf %16, %15 : vector<16x512xf32>
    %18 = arith.divf %16, %17 : vector<16x512xf32>
    %19 = arith.mulf %8, %18 : vector<16x512xf32>
    %c0_12 = arith.constant 0 : index
    %c0_13 = arith.constant 0 : index
    %20 = vector.load %arg10[%c0_12, %c0_13] : memref<16x128xf32, #tpu.memory_space<vmem>>, vector<16x128xf32>
    %c0_14 = arith.constant 0 : index
    %c0_15 = arith.constant 0 : index
    %21 = vector.load %arg7[%c0_14, %c0_15] : memref<512x128xf32, #tpu.memory_space<vmem>>, vector<512x128xf32>
    %cst_16 = arith.constant dense<0.000000e+00> : vector<16x128xf32>
    %22 = tpu.matmul %19, %21, %cst_16 {dimension_numbers = #tpu.dot_dimension_numbers<[1], [0], [0], [1], [0, 0, 1, 1], [], []>} : vector<16x512xf32>, vector<512x128xf32>, vector<16x128xf32> -> vector<16x128xf32>
    %23 = arith.addf %20, %22 : vector<16x128xf32>
    %c0_17 = arith.constant 0 : index
    %c0_18 = arith.constant 0 : index
    %24 = vector.load %arg10[%c0_17, %c0_18] : memref<16x128xf32, #tpu.memory_space<vmem>>, vector<16x128xf32>
    tpu.vector_store %arg10[%c0_17, %c0_18], %23 {strides = array<i32>} : memref<16x128xf32, #tpu.memory_space<vmem>>, vector<16x128xf32>,
    %c0_i32_19 = arith.constant 0 : i32
    %25 = arith.cmpi eq, %arg1, %c0_i32_19 : i32
    %26 = arith.extui %25 : i1 to i32
    %c0_i32_20 = arith.constant 0 : i32
    %27 = arith.cmpi ne, %26, %c0_i32_20 : i32
    scf.if %27 {
      %c0_21 = arith.constant 0 : index
      %c0_22 = arith.constant 0 : index
      %28 = vector.load %arg10[%c0_21, %c0_22] : memref<16x128xf32, #tpu.memory_space<vmem>>, vector<16x128xf32>
      %c0_23 = arith.constant 0 : index
      %c0_24 = arith.constant 0 : index
      %29 = vector.load %arg8[%c0_23, %c0_24] : memref<1x128xf32, #tpu.memory_space<vmem>>, vector<1x128xf32>
      %30 = vector.broadcast %29 : vector<1x128xf32> to vector<16x128xf32>
      %31 = arith.addf %28, %30 : vector<16x128xf32>
      %c0_25 = arith.constant 0 : index
      %c0_26 = arith.constant 0 : index
      %32 = vector.load %arg9[%c0_25, %c0_26] : memref<16x128xf32, #tpu.memory_space<vmem>>, vector<16x128xf32>
      tpu.vector_store %arg9[%c0_25, %c0_26], %31 {strides = array<i32>} : memref<16x128xf32, #tpu.memory_space<vmem>>, vector<16x128xf32>,
    } else {
    }
    return
  }
  func.func @transform_0(%arg0: i32, %arg1: i32) -> (i32, i32) {
    %c0_i32 = arith.constant 0 : i32
    %c0_i32_0 = arith.constant 0 : i32
    return %arg0, %c0_i32 : i32, i32
  }
  func.func @transform_1(%arg0: i32, %arg1: i32) -> (i32, i32) {
    %c0_i32 = arith.constant 0 : i32
    %c0_i32_0 = arith.constant 0 : i32
    return %c0_i32, %arg1 : i32, i32
  }
  func.func @transform_2(%arg0: i32, %arg1: i32) -> (i32, i32) {
    %c0_i32 = arith.constant 0 : i32
    %c0_i32_0 = arith.constant 0 : i32
    return %c0_i32, %arg1 : i32, i32
  }
  func.func @transform_3(%arg0: i32, %arg1: i32) -> (i32, i32) {
    %c0_i32 = arith.constant 0 : i32
    %c0_i32_0 = arith.constant 0 : i32
    return %c0_i32, %arg1 : i32, i32
  }
  func.func @transform_4(%arg0: i32, %arg1: i32) -> (i32, i32) {
    %c0_i32 = arith.constant 0 : i32
    %c0_i32_0 = arith.constant 0 : i32
    return %c0_i32, %arg1 : i32, i32
  }
  func.func @transform_5(%arg0: i32, %arg1: i32) -> (i32, i32) {
    %c0_i32 = arith.constant 0 : i32
    %c0_i32_0 = arith.constant 0 : i32
    return %arg1, %c0_i32 : i32, i32
  }
  func.func @transform_6(%arg0: i32, %arg1: i32) -> (i32, i32) {
    %c0_i32 = arith.constant 0 : i32
    %c0_i32_0 = arith.constant 0 : i32
    %c0_i32_1 = arith.constant 0 : i32
    return %c0_i32, %c0_i32_0 : i32, i32
  }
  func.func @transform_7(%arg0: i32, %arg1: i32) -> (i32, i32) {
    %c0_i32 = arith.constant 0 : i32
    %c0_i32_0 = arith.constant 0 : i32
    return %arg0, %c0_i32 : i32, i32
  }
}

</mosaic_0001>

<bundles_post_ra>
// kernel: tpu_custom_call.1
= control target key start
LH: loop header
LB: loop body
LE: loop exit
PB: predicated region body
PF: predicated region fallthrough
CT: control target
= control target key end

     0   :  { %12 = vsyncpa [#allocation4], 0  ;;  %s1292_s0 = inlined_call_operand.hbm [shape: f32[16,128], index: 0, kind: input, shape index: {}]   ;;  %s1293_s1 = inlined_call_operand.hbm [shape: f32[128,512], index: 1, kind: input, shape index: {}]   ;;  %s1294_s2 = inlined_call_operand.hbm [shape: f32[1,512], index: 2, kind: input, shape index: {}]   ;;  %s1295_s3 = inlined_call_operand.hbm [shape: f32[128,512], index: 3, kind: input, shape index: {}]   ;;  %s1296_s4 = inlined_call_operand.vmem [shape: f32[1,512], index: 4, kind: input, shape index: {}]   ;;  %s1297_s5 = inlined_call_operand.hbm [shape: f32[512,128], index: 5, kind: input, shape index: {}]   ;;  %s1298_s6 = inlined_call_operand.vmem [shape: f32[1,128], index: 6, kind: input, shape index: {}]   ;;  %s1299_s7 = inlined_call_operand.hbm [shape: f32[16,128], index: 7, kind: output, shape index: {}]  }
   0x1   :  { %13 = vsyncpa [#allocation7], 0 }
   0x2   :  { %14 = vsyncpa [#allocation10], 0 }
   0x3   :  { %15 = vsyncpa [#allocation5], 0  ;;  %s1148_s24 = smov [#allocation6]  }
   0x4   :  { %s33_s25 = sshll.u32 %s1148_s24, 4  ;;  %s34_s25 = int_to_ptr.vmem [resolvable:$true] %s33_s25 }
   0x5   :  { %s1028_s26 = scalar_lea.vmem %s34_s25, 8192  ;;  %p1033_p1 = scmp.lt.s32.totalorder %s34_s25, %s34_s25 }
   0x6   :  { %p1029_p0 = scmp.ne.s32.totalorder %s34_s25, %s1028_s26  ;;  %p1034_p2 = scmp.lt.s32.totalorder %s1028_s26, %s1028_s26 }
   0x8   :  { %p1035_p3 = por %p1034_p2, %p1033_p1 }
   0xa   :  { %p1036_p4 = pnand %p1035_p3, %p1029_p0 }
   0xc   :  { %1039 = shalt.err (!%p1036_p4)
}
   0xd   :  { %s1149_s27 = smov 512   ;;  %s1150_s28 = smov 32  }
   0xe   :  { %39 = dma.hbm_to_vmem [thread:$0]  %s1293_s1, 8192, %s34_s25, [#allocation7], %s1149_s27, %s1149_s27, %s1150_s28  }
   0xf   :  { %s1151_s8 = smov [#allocation9]   ;;  %s1152_s10 = smov [#allocation3]  }
  0x10   :  { %s55_s9 = sshll.u32 %s1151_s8, 4  ;;  %s21_s11 = sshll.u32 %s1152_s10, 4  ;;  %s56_s9 = int_to_ptr.vmem [resolvable:$true] %s55_s9  ;;  %s22_s11 = int_to_ptr.vmem [resolvable:$true] %s21_s11 }
  0x11   :  { %s1048_s12 = scalar_lea.vmem %s56_s9, 8192  ;;  %p1053_p6 = scmp.lt.s32.totalorder %s56_s9, %s56_s9 }
  0x12   :  { %p1049_p5 = scmp.ne.s32.totalorder %s56_s9, %s1048_s12  ;;  %p1054_p7 = scmp.lt.s32.totalorder %s1048_s12, %s1048_s12 }
  0x14   :  { %p1055_p8 = por %p1054_p7, %p1053_p6 }
  0x16   :  { %p1056_p9 = pnand %p1055_p8, %p1049_p5 }
  0x18   :  { %1059 = shalt.err (!%p1056_p9)
}
  0x19   :  { %61 = dma.hbm_to_vmem [thread:$0]  %s1295_s3, 8192, %s56_s9, [#allocation10], %s1149_s27, %s1149_s27, %s1150_s28  }
  0x1a   :  { %s1068_s15 = scalar_lea.vmem %s22_s11, 256  ;;  %p1073_p11 = scmp.lt.s32.totalorder %s22_s11, %s22_s11 }
  0x1b   :  { %p1069_p10 = scmp.ne.s32.totalorder %s22_s11, %s1068_s15  ;;  %p1074_p12 = scmp.lt.s32.totalorder %s1068_s15, %s1068_s15 }
  0x1d   :  { %p1075_p13 = por %p1074_p12, %p1073_p11 }
  0x1f   :  { %p1076_p0 = pnand %p1075_p13, %p1069_p10 }
  0x21   :  { %1079 = shalt.err (!%p1076_p0)
}
  0x22   :  { %s1153_s1 = smov 128   ;;  %s1154_s16 = smov 8  }
  0x23   :  { %27 = dma.hbm_to_vmem [thread:$0]  %s1292_s0, 256, %s22_s11, [#allocation4], %s1153_s1, %s1153_s1, %s1154_s16  }
  0x24   :  { %s1155_s19 = smov [#allocation8]   ;;  %s1156_s3 = smov [#allocation11]  }
  0x25   :  { %s46_s20 = sshll.u32 %s1155_s19, 4  ;;  %s69_s21 = sshll.u32 %s1156_s3, 4  ;;  %s47_s20 = int_to_ptr.vmem [resolvable:$true] %s46_s20  ;;  %s70_s21 = int_to_ptr.vmem [resolvable:$true] %s69_s21 }
  0x26   :  { %s1088_s22 = scalar_lea.vmem %s47_s20, 64  ;;  %p1093_p2 = scmp.lt.s32.totalorder %s47_s20, %s47_s20 }
  0x27   :  { %p1089_p1 = scmp.ne.s32.totalorder %s47_s20, %s1088_s22  ;;  %p1094_p3 = scmp.lt.s32.totalorder %s1088_s22, %s1088_s22 }
  0x29   :  { %p1095_p4 = por %p1094_p3, %p1093_p2 }
  0x2b   :  { %p1096_p5 = pnand %p1095_p4, %p1089_p1 }
  0x2d   :  { %1099 = shalt.err (!%p1096_p5)
}
  0x2e   :  { %49 = dma.hbm_to_vmem [thread:$0]  %s1294_s2, 64, %s47_s20, [#allocation7]  }
  0x2f   :  { %s1108_s25 = scalar_lea.vmem %s70_s21, 8192  ;;  %p1113_p7 = scmp.lt.s32.totalorder %s70_s21, %s70_s21 }
  0x30   :  { %p1109_p6 = scmp.ne.s32.totalorder %s70_s21, %s1108_s25  ;;  %p1114_p8 = scmp.lt.s32.totalorder %s1108_s25, %s1108_s25 }
  0x32   :  { %p1115_p9 = por %p1114_p8, %p1113_p7 }
  0x34   :  { %p1116_p10 = pnand %p1115_p9, %p1109_p6 }
  0x36   :  { %1119 = shalt.err (!%p1116_p10)
}
  0x37   :  { %75 = dma.hbm_to_vmem [thread:$0]  %s1297_s5, 8192, %s70_s21, [#allocation10], %s1153_s1, %s1153_s1, %s1154_s16  }
  0x38   :  { %1140 = dma.done.wait [#allocation4], 256  }
  0x39   :  { %1141 = vsyncadd [#allocation4], 4294967040 }
  0x3a   :  { %1142 = dma.done.wait [#allocation7], 8256  }
  0x3b   :  { %1143 = vsyncadd [#allocation7], 4294959040 }
  0x3c   :  { %1144 = dma.done.wait [#allocation10], 16384  }
  0x3d   :  { %1145 = vsyncadd [#allocation10], 4294950912  ;;  %v1157_v0 = vmov 0.0   ;;  %v162_v1 = vld [vmem:[#allocation6 + $0x1e8] sm:$0xff]  ;;  %v164_v2 = vld [vmem:[#allocation6 + $0x1f8] sm:$0xff]  ;;  %s1158_s28 = smov [#allocation12]  }
  0x3e   :  { %251 = vmatprep.mubr.f32.mxu0 %v1157_v0  ;;  %328 = vmatprep.mubr.f32.mxu1 %v1157_v0  ;;  %v161_v3 = vld [vmem:[#allocation6 + $0x1e0] sm:$0xff]  ;;  %v163_v4 = vld [vmem:[#allocation6 + $0x1f0] sm:$0xff]  ;;  %v158_v5 = vld [vmem:[#allocation6 + $0x1c8] sm:$0xff]  ;;  %s878_s29 = sshll.u32 %s1158_s28, 4  ;;  %s879_s29 = int_to_ptr.vmem [resolvable:$true] %s878_s29 }
  0x3f   :  { %187 = vmatprep.subr.mxu0 %v162_v1  ;;  %264 = vmatprep.subr.mxu1 %v164_v2  ;;  %v160_v6 = vld [vmem:[#allocation6 + $0x1d8] sm:$0xff]  ;;  %v157_v7 = vld [vmem:[#allocation6 + $0x1c0] sm:$0xff]  ;;  %v159_v8 = vld [vmem:[#allocation6 + $0x1d0] sm:$0xff]  ;;  %s1120_s30 = scalar_lea.vmem %s879_s29, 256  ;;  %p1125_p12 = scmp.lt.s32.totalorder %s879_s29, %s879_s29 }
  0x40   :  { %188 = vmatpush1.msra.mxu0 %v161_v3  ;;  %265 = vmatpush1.msra.mxu1 %v163_v4  ;;  %v154_v9 = vld [vmem:[#allocation6 + $0x1a8] sm:$0xff]  ;;  %v156_v10 = vld [vmem:[#allocation6 + $0x1b8] sm:$0xff]  ;;  %v153_v11 = vld [vmem:[#allocation6 + $0x1a0] sm:$0xff]  ;;  %p1121_p11 = scmp.ne.s32.totalorder %s879_s29, %s1120_s30  ;;  %p1126_p13 = scmp.lt.s32.totalorder %s1120_s30, %s1120_s30 }
  0x41   :  { %189 = vmatprep.subr.mxu0 %v158_v5  ;;  %266 = vmatprep.subr.mxu1 %v160_v6  ;;  %v155_v12 = vld [vmem:[#allocation6 + $0x1b0] sm:$0xff]  ;;  %v150_v13 = vld [vmem:[#allocation6 + $0x188] sm:$0xff]  ;;  %v152_v14 = vld [vmem:[#allocation6 + $0x198] sm:$0xff] }
  0x42   :  { %190 = vmatpush1.msra.mxu0 %v157_v7  ;;  %267 = vmatpush1.msra.mxu1 %v159_v8  ;;  %v149_v15 = vld [vmem:[#allocation6 + $0x180] sm:$0xff]  ;;  %v151_v16 = vld [vmem:[#allocation6 + $0x190] sm:$0xff]  ;;  %v146_v17 = vld [vmem:[#allocation6 + $0x168] sm:$0xff]  ;;  %p1127_p0 = por %p1126_p13, %p1125_p12 }
  0x43   :  { %191 = vmatprep.subr.mxu0 %v154_v9  ;;  %268 = vmatprep.subr.mxu1 %v156_v10  ;;  %v148_v18 = vld [vmem:[#allocation6 + $0x178] sm:$0xff]  ;;  %v145_v19 = vld [vmem:[#allocation6 + $0x160] sm:$0xff]  ;;  %v147_v20 = vld [vmem:[#allocation6 + $0x170] sm:$0xff] }
  0x44   :  { %192 = vmatpush1.msra.mxu0 %v153_v11  ;;  %269 = vmatpush1.msra.mxu1 %v155_v12  ;;  %v142_v21 = vld [vmem:[#allocation6 + $0x148] sm:$0xff]  ;;  %v144_v22 = vld [vmem:[#allocation6 + $0x158] sm:$0xff]  ;;  %v141_v23 = vld [vmem:[#allocation6 + $0x140] sm:$0xff]  ;;  %p1128_p1 = pnand %p1127_p0, %p1121_p11 }
  0x45   :  { %193 = vmatprep.subr.mxu0 %v150_v13  ;;  %270 = vmatprep.subr.mxu1 %v152_v14  ;;  %v143_v24 = vld [vmem:[#allocation6 + $0x150] sm:$0xff]  ;;  %v138_v25 = vld [vmem:[#allocation6 + $0x128] sm:$0xff]  ;;  %v140_v26 = vld [vmem:[#allocation6 + $0x138] sm:$0xff] }
  0x46   :  { %194 = vmatpush1.msra.mxu0 %v149_v15  ;;  %271 = vmatpush1.msra.mxu1 %v151_v16  ;;  %v137_v27 = vld [vmem:[#allocation6 + $0x120] sm:$0xff]  ;;  %v139_v28 = vld [vmem:[#allocation6 + $0x130] sm:$0xff]  ;;  %v134_v29 = vld [vmem:[#allocation6 + $0x108] sm:$0xff] }
  0x47   :  { %195 = vmatprep.subr.mxu0 %v146_v17  ;;  %272 = vmatprep.subr.mxu1 %v148_v18  ;;  %v136_v30 = vld [vmem:[#allocation6 + $0x118] sm:$0xff]  ;;  %v133_v31 = vld [vmem:[#allocation6 + $0x100] sm:$0xff]  ;;  %v135_v32 = vld [vmem:[#allocation6 + $0x110] sm:$0xff] }
  0x48   :  { %196 = vmatpush1.msra.mxu0 %v145_v19  ;;  %273 = vmatpush1.msra.mxu1 %v147_v20  ;;  %v130_v33 = vld [vmem:[#allocation6 + $0xe8] sm:$0xff]  ;;  %v132_v34 = vld [vmem:[#allocation6 + $0xf8] sm:$0xff]  ;;  %v129_v35 = vld [vmem:[#allocation6 + $0xe0] sm:$0xff] }
  0x49   :  { %197 = vmatprep.subr.mxu0 %v142_v21  ;;  %274 = vmatprep.subr.mxu1 %v144_v22  ;;  %v131_v36 = vld [vmem:[#allocation6 + $0xf0] sm:$0xff]  ;;  %v126_v37 = vld [vmem:[#allocation6 + $0xc8] sm:$0xff]  ;;  %v128_v38 = vld [vmem:[#allocation6 + $0xd8] sm:$0xff] }
  0x4a   :  { %198 = vmatpush1.msra.mxu0 %v141_v23  ;;  %275 = vmatpush1.msra.mxu1 %v143_v24  ;;  %v125_v39 = vld [vmem:[#allocation6 + $0xc0] sm:$0xff]  ;;  %v127_v40 = vld [vmem:[#allocation6 + $0xd0] sm:$0xff]  ;;  %v122_v41 = vld [vmem:[#allocation6 + $0xa8] sm:$0xff] }
  0x4b   :  { %199 = vmatprep.subr.mxu0 %v138_v25  ;;  %276 = vmatprep.subr.mxu1 %v140_v26  ;;  %v124_v42 = vld [vmem:[#allocation6 + $0xb8] sm:$0xff]  ;;  %v121_v43 = vld [vmem:[#allocation6 + $0xa0] sm:$0xff]  ;;  %v123_v44 = vld [vmem:[#allocation6 + $0xb0] sm:$0xff] }
  0x4c   :  { %200 = vmatpush1.msra.mxu0 %v137_v27  ;;  %277 = vmatpush1.msra.mxu1 %v139_v28  ;;  %v118_v45 = vld [vmem:[#allocation6 + $0x88] sm:$0xff]  ;;  %v120_v46 = vld [vmem:[#allocation6 + $0x98] sm:$0xff]  ;;  %v117_v47 = vld [vmem:[#allocation6 + $0x80] sm:$0xff] }
  0x4d   :  { %201 = vmatprep.subr.mxu0 %v134_v29  ;;  %278 = vmatprep.subr.mxu1 %v136_v30  ;;  %v119_v48 = vld [vmem:[#allocation6 + $0x90] sm:$0xff]  ;;  %v114_v49 = vld [vmem:[#allocation6 + $0x68] sm:$0xff]  ;;  %v116_v50 = vld [vmem:[#allocation6 + $0x78] sm:$0xff] }
  0x4e   :  { %202 = vmatpush1.msra.mxu0 %v133_v31  ;;  %279 = vmatpush1.msra.mxu1 %v135_v32  ;;  %v113_v51 = vld [vmem:[#allocation6 + $0x60] sm:$0xff]  ;;  %v115_v52 = vld [vmem:[#allocation6 + $0x70] sm:$0xff]  ;;  %v110_v53 = vld [vmem:[#allocation6 + $0x48] sm:$0xff] }
  0x4f   :  { %203 = vmatprep.subr.mxu0 %v130_v33  ;;  %280 = vmatprep.subr.mxu1 %v132_v34  ;;  %v112_v54 = vld [vmem:[#allocation6 + $0x58] sm:$0xff]  ;;  %v109_v55 = vld [vmem:[#allocation6 + $0x40] sm:$0xff]  ;;  %v111_v56 = vld [vmem:[#allocation6 + $0x50] sm:$0xff] }
  0x50   :  { %204 = vmatpush1.msra.mxu0 %v129_v35  ;;  %281 = vmatpush1.msra.mxu1 %v131_v36  ;;  %v106_v57 = vld [vmem:[#allocation6 + $0x28] sm:$0xff]  ;;  %v108_v58 = vld [vmem:[#allocation6 + $0x38] sm:$0xff]  ;;  %v105_v59 = vld [vmem:[#allocation6 + $0x20] sm:$0xff] }
  0x51   :  { %205 = vmatprep.subr.mxu0 %v126_v37  ;;  %282 = vmatprep.subr.mxu1 %v128_v38  ;;  %v107_v60 = vld [vmem:[#allocation6 + $0x30] sm:$0xff]  ;;  %v102_v61 = vld [vmem:[#allocation6 + $0x8] sm:$0xff]  ;;  %v104_v62 = vld [vmem:[#allocation6 + $0x18] sm:$0xff] }
  0x52   :  { %206 = vmatpush1.msra.mxu0 %v125_v39  ;;  %283 = vmatpush1.msra.mxu1 %v127_v40  ;;  %v101_v63 = vld [vmem:[#allocation6] sm:$0xff]  ;;  %v103_v1 = vld [vmem:[#allocation6 + $0x10] sm:$0xff] }
  0x53   :  { %207 = vmatprep.subr.mxu0 %v122_v41  ;;  %284 = vmatprep.subr.mxu1 %v124_v42  ;;  %v1222_v2 = vld [vmem:[#allocation3] sm:$0xff]  ;;  %v404_v4 = vld [vmem:[#allocation9 + $0x1f8] sm:$0xff]  ;;  %v401_v5 = vld [vmem:[#allocation9 + $0x1e0] sm:$0xff] }
  0x54   :  { %208 = vmatpush1.msra.mxu0 %v121_v43  ;;  %285 = vmatpush1.msra.mxu1 %v123_v44  ;;  %v402_v3 = vld [vmem:[#allocation9 + $0x1e8] sm:$0xff]  ;;  %v403_v6 = vld [vmem:[#allocation9 + $0x1f0] sm:$0xff]  ;;  %v400_v8 = vld [vmem:[#allocation9 + $0x1d8] sm:$0xff] }
  0x55   :  { %209 = vmatprep.subr.mxu0 %v118_v45  ;;  %286 = vmatprep.subr.mxu1 %v120_v46  ;;  %v398_v7 = vld [vmem:[#allocation9 + $0x1c8] sm:$0xff]  ;;  %v397_v9 = vld [vmem:[#allocation9 + $0x1c0] sm:$0xff]  ;;  %v399_v10 = vld [vmem:[#allocation9 + $0x1d0] sm:$0xff] }
  0x56   :  { %210 = vmatpush1.msra.mxu0 %v117_v47  ;;  %287 = vmatpush1.msra.mxu1 %v119_v48  ;;  %v394_v11 = vld [vmem:[#allocation9 + $0x1a8] sm:$0xff]  ;;  %v396_v12 = vld [vmem:[#allocation9 + $0x1b8] sm:$0xff]  ;;  %v393_v13 = vld [vmem:[#allocation9 + $0x1a0] sm:$0xff] }
  0x57   :  { %211 = vmatprep.subr.mxu0 %v114_v49  ;;  %288 = vmatprep.subr.mxu1 %v116_v50  ;;  %v395_v14 = vld [vmem:[#allocation9 + $0x1b0] sm:$0xff]  ;;  %v390_v15 = vld [vmem:[#allocation9 + $0x188] sm:$0xff]  ;;  %v392_v16 = vld [vmem:[#allocation9 + $0x198] sm:$0xff] }
  0x58   :  { %212 = vmatpush1.msra.mxu0 %v113_v51  ;;  %289 = vmatpush1.msra.mxu1 %v115_v52  ;;  %v389_v17 = vld [vmem:[#allocation9 + $0x180] sm:$0xff]  ;;  %v391_v18 = vld [vmem:[#allocation9 + $0x190] sm:$0xff]  ;;  %v386_v19 = vld [vmem:[#allocation9 + $0x168] sm:$0xff] }
  0x59   :  { %213 = vmatprep.subr.mxu0 %v110_v53  ;;  %290 = vmatprep.subr.mxu1 %v112_v54  ;;  %v388_v20 = vld [vmem:[#allocation9 + $0x178] sm:$0xff]  ;;  %v385_v21 = vld [vmem:[#allocation9 + $0x160] sm:$0xff]  ;;  %v387_v22 = vld [vmem:[#allocation9 + $0x170] sm:$0xff] }
  0x5a   :  { %214 = vmatpush1.msra.mxu0 %v109_v55  ;;  %291 = vmatpush1.msra.mxu1 %v111_v56  ;;  %v382_v23 = vld [vmem:[#allocation9 + $0x148] sm:$0xff]  ;;  %v384_v24 = vld [vmem:[#allocation9 + $0x158] sm:$0xff]  ;;  %v381_v25 = vld [vmem:[#allocation9 + $0x140] sm:$0xff] }
  0x5b   :  { %215 = vmatprep.subr.mxu0 %v106_v57  ;;  %292 = vmatprep.subr.mxu1 %v108_v58  ;;  %v383_v26 = vld [vmem:[#allocation9 + $0x150] sm:$0xff]  ;;  %v378_v27 = vld [vmem:[#allocation9 + $0x128] sm:$0xff]  ;;  %v380_v28 = vld [vmem:[#allocation9 + $0x138] sm:$0xff] }
  0x5c   :  { %216 = vmatpush1.msra.mxu0 %v105_v59  ;;  %293 = vmatpush1.msra.mxu1 %v107_v60  ;;  %v377_v29 = vld [vmem:[#allocation9 + $0x120] sm:$0xff]  ;;  %v379_v30 = vld [vmem:[#allocation9 + $0x130] sm:$0xff]  ;;  %v374_v31 = vld [vmem:[#allocation9 + $0x108] sm:$0xff] }
  0x5d   :  { %217 = vmatprep.subr.mxu0 %v102_v61  ;;  %294 = vmatprep.subr.mxu1 %v104_v62  ;;  %v376_v32 = vld [vmem:[#allocation9 + $0x118] sm:$0xff]  ;;  %v373_v33 = vld [vmem:[#allocation9 + $0x100] sm:$0xff]  ;;  %v375_v34 = vld [vmem:[#allocation9 + $0x110] sm:$0xff] }
  0x5e   :  { %218 = vmatpush1.msra.mxu0 %v101_v63  ;;  %295 = vmatpush1.msra.mxu1 %v103_v1  ;;  %v370_v35 = vld [vmem:[#allocation9 + $0xe8] sm:$0xff]  ;;  %v372_v36 = vld [vmem:[#allocation9 + $0xf8] sm:$0xff]  ;;  %v369_v37 = vld [vmem:[#allocation9 + $0xe0] sm:$0xff] }
  0x5f   :  { %252 = vmatmul.mubr.f32.vlgmr.msra.gmra.mxu0 %v1222_v2  ;;  %329 = vmatmul.mubr.f32.vlgmr.msra.gmra.mxu1 %v1222_v2  ;;  %v371_v38 = vld [vmem:[#allocation9 + $0xf0] sm:$0xff]  ;;  %v366_v39 = vld [vmem:[#allocation9 + $0xc8] sm:$0xff]  ;;  %v368_v40 = vld [vmem:[#allocation9 + $0xd8] sm:$0xff] }
  0x60   :  { %427 = vmatprep.subr.mxu0 %v402_v3  ;;  %504 = vmatprep.subr.mxu1 %v404_v4  ;;  %v365_v41 = vld [vmem:[#allocation9 + $0xc0] sm:$0xff]  ;;  %v367_v42 = vld [vmem:[#allocation9 + $0xd0] sm:$0xff]  ;;  %v362_v43 = vld [vmem:[#allocation9 + $0xa8] sm:$0xff] }
  0x61   :  { %428 = vmatpush1.msra.mxu0 %v401_v5  ;;  %505 = vmatpush1.msra.mxu1 %v403_v6  ;;  %v364_v44 = vld [vmem:[#allocation9 + $0xb8] sm:$0xff]  ;;  %v361_v45 = vld [vmem:[#allocation9 + $0xa0] sm:$0xff]  ;;  %v363_v46 = vld [vmem:[#allocation9 + $0xb0] sm:$0xff] }
  0x62   :  { %429 = vmatprep.subr.mxu0 %v398_v7  ;;  %506 = vmatprep.subr.mxu1 %v400_v8  ;;  %v358_v47 = vld [vmem:[#allocation9 + $0x88] sm:$0xff]  ;;  %v360_v48 = vld [vmem:[#allocation9 + $0x98] sm:$0xff]  ;;  %v357_v49 = vld [vmem:[#allocation9 + $0x80] sm:$0xff] }
  0x63   :  { %430 = vmatpush1.msra.mxu0 %v397_v9  ;;  %507 = vmatpush1.msra.mxu1 %v399_v10  ;;  %v359_v50 = vld [vmem:[#allocation9 + $0x90] sm:$0xff]  ;;  %v354_v51 = vld [vmem:[#allocation9 + $0x68] sm:$0xff]  ;;  %v356_v52 = vld [vmem:[#allocation9 + $0x78] sm:$0xff] }
  0x64   :  { %431 = vmatprep.subr.mxu0 %v394_v11  ;;  %508 = vmatprep.subr.mxu1 %v396_v12  ;;  %v353_v53 = vld [vmem:[#allocation9 + $0x60] sm:$0xff]  ;;  %v355_v54 = vld [vmem:[#allocation9 + $0x70] sm:$0xff]  ;;  %v350_v56 = vld [vmem:[#allocation9 + $0x48] sm:$0xff] }
  0x65   :  { %432 = vmatpush1.msra.mxu0 %v393_v13  ;;  %509 = vmatpush1.msra.mxu1 %v395_v14  ;;  %v100_v55 = vld [vmem:[#allocation3 + $0x8] sm:$0xff]  ;;  %v349_v58 = vld [vmem:[#allocation9 + $0x40] sm:$0xff]  ;;  %v346_v60 = vld [vmem:[#allocation9 + $0x28] sm:$0xff] }
  0x66   :  { %433 = vmatprep.subr.mxu0 %v390_v15  ;;  %510 = vmatprep.subr.mxu1 %v392_v16  ;;  %v352_v57 = vld [vmem:[#allocation9 + $0x58] sm:$0xff]  ;;  %v351_v59 = vld [vmem:[#allocation9 + $0x50] sm:$0xff]  ;;  %v345_v62 = vld [vmem:[#allocation9 + $0x20] sm:$0xff] }
  0x67   :  { %434 = vmatpush1.msra.mxu0 %v389_v17  ;;  %511 = vmatpush1.msra.mxu1 %v391_v18  ;;  %v348_v61 = vld [vmem:[#allocation9 + $0x38] sm:$0xff]  ;;  %v347_v63 = vld [vmem:[#allocation9 + $0x30] sm:$0xff]  ;;  %v342_v1 = vld [vmem:[#allocation9 + $0x8] sm:$0xff] }
  0x68   :  { %435 = vmatprep.subr.mxu0 %v386_v19  ;;  %512 = vmatprep.subr.mxu1 %v388_v20  ;;  %v344_v3 = vld [vmem:[#allocation9 + $0x18] sm:$0xff]  ;;  %v341_v4 = vld [vmem:[#allocation9] sm:$0xff]  ;;  %v343_v5 = vld [vmem:[#allocation9 + $0x10] sm:$0xff] }
  0x69   :  { %436 = vmatpush1.msra.mxu0 %v385_v21  ;;  %513 = vmatpush1.msra.mxu1 %v387_v22  ;;  %v670_v6 = vld [vmem:[#allocation11 + $0xf8] sm:$0xff]  ;;  %v669_v10 = vld [vmem:[#allocation11 + $0xf0] sm:$0xff]  ;;  %v668_v13 = vld [vmem:[#allocation11 + $0xe8] sm:$0xff] }
  0x6a   :  { %437 = vmatprep.subr.mxu0 %v382_v23  ;;  %514 = vmatprep.subr.mxu1 %v384_v24  ;;  %v702_v7 = vld [vmem:[#allocation11 + $0x1f8] sm:$0xff]  ;;  %v701_v11 = vld [vmem:[#allocation11 + $0x1f0] sm:$0xff]  ;;  %v652_v14 = vld [vmem:[#allocation11 + $0x68] sm:$0xff] }
  0x6b   :  { %438 = vmatpush1.msra.mxu0 %v381_v25  ;;  %515 = vmatpush1.msra.mxu1 %v383_v26  ;;  %v654_v8 = vld [vmem:[#allocation11 + $0x78] sm:$0xff]  ;;  %v653_v12 = vld [vmem:[#allocation11 + $0x70] sm:$0xff]  ;;  %v684_v15 = vld [vmem:[#allocation11 + $0x168] sm:$0xff] }
  0x6c   :  { %439 = vmatprep.subr.mxu0 %v378_v27  ;;  %516 = vmatprep.subr.mxu1 %v380_v28  ;;  %v686_v9 = vld [vmem:[#allocation11 + $0x178] sm:$0xff]  ;;  %v667_v16 = vld [vmem:[#allocation11 + $0xe0] sm:$0xff]  ;;  %v665_v24 = vld [vmem:[#allocation11 + $0xd0] sm:$0xff] }
  0x6d   :  { %440 = vmatpush1.msra.mxu0 %v377_v29  ;;  %517 = vmatpush1.msra.mxu1 %v379_v30  ;;  %v699_v17 = vld [vmem:[#allocation11 + $0x1e0] sm:$0xff]  ;;  %v666_v20 = vld [vmem:[#allocation11 + $0xd8] sm:$0xff]  ;;  %v697_v25 = vld [vmem:[#allocation11 + $0x1d0] sm:$0xff] }
  0x6e   :  { %441 = vmatprep.subr.mxu0 %v374_v31  ;;  %518 = vmatprep.subr.mxu1 %v376_v32  ;;  %v651_v18 = vld [vmem:[#allocation11 + $0x60] sm:$0xff]  ;;  %v698_v21 = vld [vmem:[#allocation11 + $0x1d8] sm:$0xff]  ;;  %v649_v26 = vld [vmem:[#allocation11 + $0x50] sm:$0xff] }
  0x6f   :  { %442 = vmatpush1.msra.mxu0 %v373_v33  ;;  %519 = vmatpush1.msra.mxu1 %v375_v34  ;;  %v683_v19 = vld [vmem:[#allocation11 + $0x160] sm:$0xff]  ;;  %v650_v22 = vld [vmem:[#allocation11 + $0x58] sm:$0xff]  ;;  %v681_v27 = vld [vmem:[#allocation11 + $0x150] sm:$0xff] }
  0x70   :  { %443 = vmatprep.subr.mxu0 %v370_v35  ;;  %520 = vmatprep.subr.mxu1 %v372_v36  ;;  %v682_v23 = vld [vmem:[#allocation11 + $0x158] sm:$0xff]  ;;  %v664_v28 = vld [vmem:[#allocation11 + $0xc8] sm:$0xff]  ;;  %v663_v32 = vld [vmem:[#allocation11 + $0xc0] sm:$0xff] }
  0x71   :  { %444 = vmatpush1.msra.mxu0 %v369_v37  ;;  %521 = vmatpush1.msra.mxu1 %v371_v38  ;;  %v696_v29 = vld [vmem:[#allocation11 + $0x1c8] sm:$0xff]  ;;  %v695_v33 = vld [vmem:[#allocation11 + $0x1c0] sm:$0xff]  ;;  %v662_v36 = vld [vmem:[#allocation11 + $0xb8] sm:$0xff] }
  0x72   :  { %445 = vmatprep.subr.mxu0 %v366_v39  ;;  %522 = vmatprep.subr.mxu1 %v368_v40  ;;  %v648_v30 = vld [vmem:[#allocation11 + $0x48] sm:$0xff]  ;;  %v647_v34 = vld [vmem:[#allocation11 + $0x40] sm:$0xff]  ;;  %v694_v37 = vld [vmem:[#allocation11 + $0x1b8] sm:$0xff] }
  0x73   :  { %446 = vmatpush1.msra.mxu0 %v365_v41  ;;  %523 = vmatpush1.msra.mxu1 %v367_v42  ;;  %v680_v31 = vld [vmem:[#allocation11 + $0x148] sm:$0xff]  ;;  %v679_v35 = vld [vmem:[#allocation11 + $0x140] sm:$0xff]  ;;  %v646_v38 = vld [vmem:[#allocation11 + $0x38] sm:$0xff] }
  0x74   :  { %447 = vmatprep.subr.mxu0 %v362_v43  ;;  %524 = vmatprep.subr.mxu1 %v364_v44  ;;  %v678_v39 = vld [vmem:[#allocation11 + $0x138] sm:$0xff]  ;;  %v661_v40 = vld [vmem:[#allocation11 + $0xb0] sm:$0xff]  ;;  %v660_v44 = vld [vmem:[#allocation11 + $0xa8] sm:$0xff] }
  0x75   :  { %448 = vmatpush1.msra.mxu0 %v361_v45  ;;  %525 = vmatpush1.msra.mxu1 %v363_v46  ;;  %v693_v41 = vld [vmem:[#allocation11 + $0x1b0] sm:$0xff]  ;;  %v692_v45 = vld [vmem:[#allocation11 + $0x1a8] sm:$0xff] }
  0x76   :  { %449 = vmatprep.subr.mxu0 %v358_v47  ;;  %526 = vmatprep.subr.mxu1 %v360_v48  ;;  %v645_v42 = vld [vmem:[#allocation11 + $0x30] sm:$0xff]  ;;  %v644_v46 = vld [vmem:[#allocation11 + $0x28] sm:$0xff]  ;;  %v659_v48 = vld [vmem:[#allocation11 + $0xa0] sm:$0xff] }
  0x77   :  { %450 = vmatpush1.msra.mxu0 %v357_v49  ;;  %527 = vmatpush1.msra.mxu1 %v359_v50  ;;  %v677_v43 = vld [vmem:[#allocation11 + $0x130] sm:$0xff]  ;;  %v676_v47 = vld [vmem:[#allocation11 + $0x128] sm:$0xff]  ;;  %v691_v49 = vld [vmem:[#allocation11 + $0x1a0] sm:$0xff] }
  0x78   :  { %451 = vmatprep.subr.mxu0 %v354_v51  ;;  %528 = vmatprep.subr.mxu1 %v356_v52  ;;  %v643_v50 = vld [vmem:[#allocation11 + $0x20] sm:$0xff]  ;;  %v658_v52 = vld [vmem:[#allocation11 + $0x98] sm:$0xff] }
  0x79   :  { %257 = vmatprep.mubr.f32.mxu0 %v1157_v0  ;;  %334 = vmatprep.mubr.f32.mxu1 %v1157_v0  ;;  %v675_v51 = vld [vmem:[#allocation11 + $0x120] sm:$0xff] }
  0x7a   :  { %452 = vmatpush1.msra.mxu0 %v353_v53  ;;  %529 = vmatpush1.msra.mxu1 %v355_v54  ;;  %v690_v53 = vld [vmem:[#allocation11 + $0x198] sm:$0xff] }
  0x7b   :  { %258 = vmatmul.mubr.f32.gmra.mxu0 %v100_v55  ;;  %335 = vmatmul.mubr.f32.gmra.mxu1 %v100_v55  ;;  %v642_v54 = vld [vmem:[#allocation11 + $0x18] sm:$0xff] }
  0x7c   :  { %453 = vmatprep.subr.mxu0 %v350_v56  ;;  %530 = vmatprep.subr.mxu1 %v352_v57  ;;  %v657_v56 = vld [vmem:[#allocation11 + $0x90] sm:$0xff] }
  0x7d   :  { %454 = vmatpush1.msra.mxu0 %v349_v58  ;;  %531 = vmatpush1.msra.mxu1 %v351_v59  ;;  %v689_v57 = vld [vmem:[#allocation11 + $0x190] sm:$0xff] }
  0x7e   :  { %455 = vmatprep.subr.mxu0 %v346_v60  ;;  %532 = vmatprep.subr.mxu1 %v348_v61  ;;  %v641_v58 = vld [vmem:[#allocation11 + $0x10] sm:$0xff]  ;;  %v656_v60 = vld [vmem:[#allocation11 + $0x88] sm:$0xff] }
  0x7f   :  { %456 = vmatpush1.msra.mxu0 %v345_v62  ;;  %533 = vmatpush1.msra.mxu1 %v347_v63  ;;  %v673_v59 = vld [vmem:[#allocation11 + $0x110] sm:$0xff]  ;;  %v688_v61 = vld [vmem:[#allocation11 + $0x188] sm:$0xff] }
  0x80   :  { %457 = vmatprep.subr.mxu0 %v342_v1  ;;  %534 = vmatprep.subr.mxu1 %v344_v3  ;;  %v640_v62 = vld [vmem:[#allocation11 + $0x8] sm:$0xff]  ;;  %v655_v1 = vld [vmem:[#allocation11 + $0x80] sm:$0xff] }
  0x81   :  { %458 = vmatpush1.msra.mxu0 %v341_v4  ;;  %491 = vmatprep.mubr.f32.mxu0 %v1157_v0  ;;  %v672_v63 = vld [vmem:[#allocation11 + $0x108] sm:$0xff]  ;;  %v687_v3 = vld [vmem:[#allocation11 + $0x180] sm:$0xff] }
  0x82   :  { %535 = vmatpush1.msra.mxu1 %v343_v5  ;;  %568 = vmatprep.mubr.f32.mxu1 %v1157_v0  ;;  %v639_v4 = vld [vmem:[#allocation11] sm:$0xff] }
  0x83   :  { %492 = vmatmul.mubr.f32.vlgmr.msra.gmra.mxu0 %v1222_v2  ;;  %569 = vmatmul.mubr.f32.vlgmr.msra.gmra.mxu1 %v1222_v2  ;;  %v685_v2 = vld [vmem:[#allocation11 + $0x170] sm:$0xff]  ;;  %v671_v5 = vld [vmem:[#allocation11 + $0x100] sm:$0xff] }
  0x84   :  { %497 = vmatprep.mubr.f32.mxu0 %v1157_v0  ;;  %574 = vmatprep.mubr.f32.mxu1 %v1157_v0  ;;  %v700_v0 = vld [vmem:[#allocation11 + $0x1e8] sm:$0xff] }
  0x85   :  { %901 = vmatprep.subr.mxu0 %v670_v6  ;;  %939 = vmatprep.subr.mxu1 %v702_v7  ;;  %v167_v6 = vlaneseq }
  0x86   :  { %902 = vmatpush3.msra.mxu0 %v654_v8  ;;  %940 = vmatpush3.msra.mxu1 %v686_v9 }
  0x87   :  { %498 = vmatmul.mubr.f32.gmra.mxu0 %v100_v55  ;;  %575 = vmatmul.mubr.f32.gmra.mxu1 %v100_v55  ;;  %v674_v55 = vld [vmem:[#allocation11 + $0x118] sm:$0xff]  ;;  %v1238_v9 = vshrl.u32 %v167_v6, 7 }
  0x88   :  { %903 = vmatprep.subr.mxu0 %v669_v10  ;;  %941 = vmatprep.subr.mxu1 %v701_v11 }
  0x89   :  { %904 = vmatpush3.msra.mxu0 %v653_v12  ;;  %942 = vmatpush3.msra.mxu1 %v685_v2 }
  0x8a   :  { %905 = vmatprep.subr.mxu0 %v668_v13  ;;  %943 = vmatprep.subr.mxu1 %v700_v0  ;;  %v405_v13 = vld [vmem:[%s1296_s4] sm:$0xf]  ;;  %v169_v0 = vsub.s32 0, %v1238_v9 }
  0x8b   :  { %906 = vmatpush3.msra.mxu0 %v652_v14  ;;  %944 = vmatpush3.msra.mxu1 %v684_v15  ;;  %v177_v14 = vsub.s32 2, %v1238_v9  ;;  %v173_v15 = vsub.s32 1, %v1238_v9 }
  0x8c   :  { %907 = vmatprep.subr.mxu0 %v667_v16  ;;  %945 = vmatprep.subr.mxu1 %v699_v17  ;;  %v181_v16 = vsub.s32 3, %v1238_v9  ;;  %v410_v17 = vrot.slane %v405_v13, %v169_v0 }
  0x8d   :  { %908 = vmatpush3.msra.mxu0 %v651_v18  ;;  %946 = vmatpush3.msra.mxu1 %v683_v19  ;;  %v418_v18 = vrot.slane %v405_v13, %v177_v14 }
  0x8e   :  { %909 = vmatprep.subr.mxu0 %v666_v20  ;;  %947 = vmatprep.subr.mxu1 %v698_v21  ;;  %v414_v21 = vrot.slane %v405_v13, %v173_v15 }
  0x8f   :  { %910 = vmatpush3.msra.mxu0 %v650_v22  ;;  %948 = vmatpush3.msra.mxu1 %v682_v23  ;;  %v422_v22 = vrot.slane %v405_v13, %v181_v16 }
  0x90   :  { %911 = vmatprep.subr.mxu0 %v665_v24  ;;  %949 = vmatprep.subr.mxu1 %v697_v25 }
  0x91   :  { %912 = vmatpush3.msra.mxu0 %v649_v26  ;;  %950 = vmatpush3.msra.mxu1 %v681_v27 }
  0x92   :  { %913 = vmatprep.subr.mxu0 %v664_v28  ;;  %951 = vmatprep.subr.mxu1 %v696_v29 }
  0x93   :  { %914 = vmatpush3.msra.mxu0 %v648_v30  ;;  %952 = vmatpush3.msra.mxu1 %v680_v31 }
  0x94   :  { %915 = vmatprep.subr.mxu0 %v663_v32  ;;  %953 = vmatprep.subr.mxu1 %v695_v33 }
  0x95   :  { %916 = vmatpush3.msra.mxu0 %v647_v34  ;;  %954 = vmatpush3.msra.mxu1 %v679_v35 }
  0x96   :  { %917 = vmatprep.subr.mxu0 %v662_v36  ;;  %955 = vmatprep.subr.mxu1 %v694_v37 }
  0x97   :  { %918 = vmatpush3.msra.mxu0 %v646_v38  ;;  %956 = vmatpush3.msra.mxu1 %v678_v39 }
  0x98   :  { %919 = vmatprep.subr.mxu0 %v661_v40  ;;  %957 = vmatprep.subr.mxu1 %v693_v41 }
  0x99   :  { %920 = vmatpush3.msra.mxu0 %v645_v42  ;;  %958 = vmatpush3.msra.mxu1 %v677_v43 }
  0x9a   :  { %921 = vmatprep.subr.mxu0 %v660_v44  ;;  %959 = vmatprep.subr.mxu1 %v692_v45 }
  0x9b   :  { %922 = vmatpush3.msra.mxu0 %v644_v46  ;;  %960 = vmatpush3.msra.mxu1 %v676_v47 }
  0x9c   :  { %923 = vmatprep.subr.mxu0 %v659_v48  ;;  %961 = vmatprep.subr.mxu1 %v691_v49 }
  0x9d   :  { %924 = vmatpush3.msra.mxu0 %v643_v50  ;;  %962 = vmatpush3.msra.mxu1 %v675_v51 }
  0x9e   :  { %925 = vmatprep.subr.mxu0 %v658_v52  ;;  %963 = vmatprep.subr.mxu1 %v690_v53 }
  0x9f   :  { %926 = vmatpush3.msra.mxu0 %v642_v54  ;;  %964 = vmatpush3.msra.mxu1 %v674_v55 }
  0xa0   :  { %927 = vmatprep.subr.mxu0 %v657_v56  ;;  %965 = vmatprep.subr.mxu1 %v689_v57 }
  0xa1   :  { %928 = vmatpush3.msra.mxu0 %v641_v58  ;;  %966 = vmatpush3.msra.mxu1 %v673_v59 }
  0xa2   :  { %929 = vmatprep.subr.mxu0 %v656_v60  ;;  %967 = vmatprep.subr.mxu1 %v688_v61 }
  0xa3   :  { %930 = vmatpush3.msra.mxu0 %v640_v62  ;;  %968 = vmatpush3.msra.mxu1 %v672_v63  ;;  %v165_v63 = vld [vmem:[#allocation8] sm:$0xf] }
  0xa4   :  { %931 = vmatprep.subr.mxu0 %v655_v1  ;;  %969 = vmatprep.subr.mxu1 %v687_v3  ;;  %v174_v1 = vrot.slane %v165_v63, %v173_v15  ;;  %v170_v3 = vrot.slane %v165_v63, %v169_v0 }
  0xa5   :  { %932 = vmatpush3.msra.mxu0 %v639_v4  ;;  %970 = vmatpush3.msra.mxu1 %v671_v5  ;;  %v182_v4 = vrot.slane %v165_v63, %v181_v16  ;;  %v178_v5 = vrot.slane %v165_v63, %v177_v14 }
 0x11f   :  { %v1234_v7 = vpop.f32.mrf.mxu0  ;;  %v1236_v8 = vpop.f32.mrf.mxu1 }
 0x120   :  { %v331_v15 = vadd.f32 %v1236_v8, %v178_v5 }
 0x121   :  { %v1240_v10 = vpop.f32.mrf.mxu0  ;;  %v1242_v11 = vpop.f32.mrf.mxu1 }
 0x13b   :  { %v1244_v12 = vpop.f32.mrf.mxu0  ;;  %v1246_v2 = vpop.f32.mrf.mxu1 }
 0x13d   :  { %v1259_v19 = vpop.f32.mrf.mxu0  ;;  %v1261_v20 = vpop.f32.mrf.mxu1 }
 0x13e   :  { %v262_v9 = vadd.f32 %v1259_v19, %v174_v1 }
 0x143   :  { %v493_v23 = vpop.f32.mrf.mxu0  ;;  %v570_v24 = vpop.f32.mrf.mxu1 }
 0x144   :  { %v494_v25 = vadd.f32 %v493_v23, %v410_v17  ;;  %v571_v26 = vadd.f32 %v570_v24, %v418_v18 }
 0x145   :  { %v495_v27 = vpop.f32.mrf.mxu0  ;;  %v572_v28 = vpop.f32.mrf.mxu1 }
 0x146   :  { %v892_v29 = vmul.f32 -1.442695, %v494_v25  ;;  %v894_v30 = vmul.f32 -1.442695, %v571_v26  ;;  %v496_v31 = vadd.f32 %v495_v27, %v414_v21  ;;  %v573_v32 = vadd.f32 %v572_v28, %v422_v22 }
 0x147   :  { %v499_v33 = vpop.f32.mrf.mxu0  ;;  %v576_v34 = vpop.f32.mrf.mxu1  ;;  %v339_v28 = vadd.f32 %v1261_v20, %v182_v4 }
 0x148   :  { %988 = vpow2.f32 %v892_v29  ;;  %v893_v35 = vmul.f32 -1.442695, %v496_v31  ;;  %v895_v36 = vmul.f32 -1.442695, %v573_v32  ;;  %v500_v37 = vadd.f32 %v499_v33, %v410_v17 }
 0x149   :  { %990 = vpow2.f32 %v894_v30  ;;  %v577_v38 = vadd.f32 %v576_v34, %v418_v18  ;;  %v501_v39 = vpop.f32.mrf.mxu0  ;;  %v578_v40 = vpop.f32.mrf.mxu1  ;;  %v256_v17 = vadd.f32 %v1240_v10, %v174_v1  ;;  %v260_v10 = vadd.f32 %v1244_v12, %v170_v3 }
 0x14a   :  { %992 = vpow2.f32 %v893_v35  ;;  %v896_v41 = vmul.f32 -1.442695, %v500_v37  ;;  %v502_v42 = vadd.f32 %v501_v39, %v414_v21  ;;  %v579_v43 = vadd.f32 %v578_v40, %v422_v22 }
 0x14b   :  { %994 = vpow2.f32 %v895_v36  ;;  %v898_v44 = vmul.f32 -1.442695, %v577_v38  ;;  %v254_v21 = vadd.f32 %v1234_v7, %v170_v3  ;;  %v333_v22 = vadd.f32 %v1242_v11, %v182_v4 }
 0x14c   :  { %996 = vpow2.f32 %v896_v41  ;;  %v897_v45 = vmul.f32 -1.442695, %v502_v42  ;;  %v899_v46 = vmul.f32 -1.442695, %v579_v43  ;;  %v337_v11 = vadd.f32 %v1246_v2, %v178_v5  ;;  %v900_v2 = vld [vmem:[%s1298_s6] ss:$0 sm:$0xff] }
 0x14d   :  { %998 = vpow2.f32 %v898_v44 }
 0x14e   :  { %1000 = vpow2.f32 %v897_v45 }
 0x14f   :  { %1002 = vpow2.f32 %v899_v46 }
 0x155   :  { %v989_v47 = vpop.eup %988 }
 0x156   :  { %v991_v48 = vpop.eup %990  ;;  %v605_v49 = vadd.f32 1.0, %v989_v47 }
 0x157   :  { %v993_v50 = vpop.eup %992  ;;  %v607_v51 = vadd.f32 1.0, %v991_v48 }
 0x158   :  { %v995_v52 = vpop.eup %994  ;;  %1004 = vrcp.f32 %v605_v49  ;;  %v606_v53 = vadd.f32 1.0, %v993_v50 }
 0x159   :  { %v997_v54 = vpop.eup %996  ;;  %1006 = vrcp.f32 %v607_v51  ;;  %v608_v55 = vadd.f32 1.0, %v995_v52 }
 0x15a   :  { %v999_v56 = vpop.eup %998  ;;  %1008 = vrcp.f32 %v606_v53  ;;  %v609_v57 = vadd.f32 1.0, %v997_v54 }
 0x15b   :  { %v1001_v58 = vpop.eup %1000  ;;  %1010 = vrcp.f32 %v608_v55  ;;  %v611_v59 = vadd.f32 1.0, %v999_v56 }
 0x15c   :  { %v1003_v60 = vpop.eup %1002  ;;  %1012 = vrcp.f32 %v609_v57  ;;  %v610_v61 = vadd.f32 1.0, %v1001_v58 }
 0x15d   :  { %1014 = vrcp.f32 %v611_v59  ;;  %v612_v62 = vadd.f32 1.0, %v1003_v60 }
 0x15e   :  { %1016 = vrcp.f32 %v610_v61 }
 0x15f   :  { %1018 = vrcp.f32 %v612_v62 }
 0x165   :  { %v1005_v6 = vpop.eup %1004 }
 0x166   :  { %v1007_v13 = vpop.eup %1006  ;;  %v629_v26 = vmul.f32 %v1005_v6, %v254_v21 }
 0x167   :  { %v1009_v18 = vpop.eup %1008  ;;  %v631_v14 = vmul.f32 %v1007_v13, %v331_v15 }
 0x168   :  { %v1011_v23 = vpop.eup %1010  ;;  %v630_v24 = vmul.f32 %v1009_v18, %v256_v17 }
 0x169   :  { %v1013_v0 = vpop.eup %1012  ;;  %v632_v25 = vmul.f32 %v1011_v23, %v333_v22 }
 0x16a   :  { %v1015_v16 = vpop.eup %1014  ;;  %767 = vmatprep.mubr.f32.mxu0 %v630_v24  ;;  %v633_v30 = vmul.f32 %v1013_v0, %v260_v10 }
 0x16b   :  { %v1017_v27 = vpop.eup %1016  ;;  %842 = vmatprep.mubr.f32.mxu1 %v632_v25  ;;  %768 = vmatmul.mubr.f32.vlgmr.msra.gmra.mxu0 %v629_v26  ;;  %v635_v31 = vmul.f32 %v1015_v16, %v337_v11 }
 0x16c   :  { %v1019_v7 = vpop.eup %1018  ;;  %843 = vmatmul.mubr.f32.vlgmr.msra.gmra.mxu1 %v631_v14  ;;  %v634_v8 = vmul.f32 %v1017_v27, %v262_v9 }
 0x16d   :  { %v636_v29 = vmul.f32 %v1019_v7, %v339_v28 }
 0x16e   :  { %772 = vmatprep.mubr.f32.mxu0 %v634_v8 }
 0x16f   :  { %847 = vmatprep.mubr.f32.mxu1 %v636_v29  ;;  %773 = vmatmul.mubr.f32.gmra.mxu0 %v633_v30 }
 0x170   :  { %848 = vmatmul.mubr.f32.gmra.mxu1 %v635_v31 }
 0x22b   :  { %v933_v19 = vpop.f32.mrf.mxu0 }
 0x22c   :  { %v971_v32 = vpop.f32.mrf.mxu1 }
 0x22d   :  { %v934_v33 = vpop.f32.mrf.mxu0 }
 0x22e   :  { %v935_v12 = vadd.f32 %v934_v33, %v933_v19  ;;  %v972_v34 = vpop.f32.mrf.mxu1 }
 0x22f   :  { %v973_v20 = vadd.f32 %v972_v34, %v971_v32  ;;  %v936_v35 = vpop.f32.mrf.mxu0 }
 0x230   :  { %v974_v36 = vpop.f32.mrf.mxu1 }
 0x231   :  { %v845_v37 = vadd.f32 %v973_v20, %v935_v12  ;;  %v937_v38 = vpop.f32.mrf.mxu0 }
 0x232   :  { %v938_v39 = vadd.f32 %v937_v38, %v936_v35  ;;  %v975_v40 = vpop.f32.mrf.mxu1 }
 0x233   :  { %v869_v41 = vadd.f32 %v900_v2, %v845_v37  ;;  %v976_v42 = vadd.f32 %v975_v40, %v974_v36 }
 0x235   :  { %871 = vst [vmem:[#allocation12] sm:$0xff] %v869_v41  ;;  %v850_v43 = vadd.f32 %v976_v42, %v938_v39 }
 0x237   :  { %v870_v44 = vadd.f32 %v900_v2, %v850_v43 }
 0x239   :  { %872 = vst [vmem:[#allocation12 + $0x8] sm:$0xff] %v870_v44 }
 0x23a   :  { %1131 = shalt.err (!%p1128_p1)
}
 0x23b   :  { %884 = dma.vmem_to_hbm [thread:$0]  %s879_s29, 256, %s1299_s7, [#allocation5], %s1153_s1, %s1153_s1, %s1154_s16  }
 0x23c   :  { %1146 = dma.done.wait [#allocation5], 256  }
 0x23d   :  { %1147 = vsyncadd [#allocation5], 4294967040 }
 0x23e   :  { %888 = vsyncpa [#allocation4], 1 }
 0x23f   :  { %889 = vsyncpa [#allocation7], 1 }
 0x240   :  { %890 = vsyncpa [#allocation10], 1 }
 0x241   :  { %891 = vsyncpa [#allocation5], 1 }

</bundles_post_ra>
